<compile_context>
chip_gen: v7x
topology: tpu7x:2x2x1
jax: 0.10.0
libtpu: 0.0.40
codegen_flags: <defaults>
</compile_context>

<pallas_src>
import math

import jax
import jax.numpy as jnp
from jax.experimental import pallas as pl
from jax.experimental.pallas import tpu as pltpu

_HALF_LOG_2PI = 0.5 * math.log(2.0 * math.pi)
_LANES = 128


def _round_up(n: int, m: int) -> int:
    return ((n + m - 1) // m) * m


def _nll_partial_kernel(x_ref, mu_ref, sigma_ref, out_ref, acc_ref):
    """Accumulates sum over the tile of (-0.5*z^2 - log(sigma)), z=(x-mu)/sigma.

    The -0.5*log(2*pi) constant per element is added analytically in the
    wrapper (n_elem * const), so padded elements (x=mu=0, sigma=1) contribute
    exactly zero to the accumulator.
    """
    t = pl.program_id(1)  # reduction axis over row tiles

    @pl.when(t == 0)
    def _():
        acc_ref[...] = jnp.zeros_like(acc_ref)

    x = x_ref[...]
    mu = mu_ref[...]
    sigma = sigma_ref[...]
    # TODO(synk): pl.reciprocal(sigma, approx=True) would move the divide to
    # the idle EUP slot, but the kernel is HBM-bandwidth bound and the exact
    # divide keeps tight numerical agreement with the reference.
    z = (x - mu) / sigma
    # Hot loop: pure elementwise VPU work into a full-tile accumulator.
    acc_ref[...] += -0.5 * z * z - jnp.log(sigma)

    @pl.when(t == pl.num_programs(1) - 1)
    def _():
        # Single fold per parallel slice to a lane-dense (8, 128) partial.
        out_ref[...] = jnp.sum(acc_ref[...].reshape(-1, 8, _LANES), axis=0)


def nll_loss(new_obs, loc, scale, max_logvar, min_logvar, *,
             tile_rows: int = 1024, num_parallel: int = 2):
    B, D = new_obs.shape
    assert loc.shape == (B, D) and scale.shape == (B, D)
    assert max_logvar.shape == (1, D) and min_logvar.shape == (1, D)

    n_elem = B * D
    rows = -(-n_elem // _LANES)                               # ceil(n/128)
    tile_rows = max(8, min(tile_rows, _round_up(rows, 8)))    # multiple of 8
    # Only split across cores when there is more than one tile per core.
    n_par = num_parallel if rows >= num_parallel * tile_rows else 1
    padded_rows = _round_up(rows, tile_rows * n_par)
    n_tiles = padded_rows // (tile_rows * n_par)              # per parallel slice
    n_pad = padded_rows * _LANES - n_elem

    def as_slab(a, fill):
        flat = a.reshape(-1).astype(jnp.float32)
        if n_pad:
            flat = jnp.pad(flat, (0, n_pad), constant_values=fill)
        return flat.reshape(padded_rows, _LANES)

    x = as_slab(new_obs, 0.0)
    mu = as_slab(loc, 0.0)
    sigma = as_slab(scale, 1.0)   # padded elements contribute exactly 0

    tiled = pl.BlockSpec((tile_rows, _LANES), lambda p, t: (p * n_tiles + t, 0))

    partials = pl.pallas_call(
        _nll_partial_kernel,
        out_shape=jax.ShapeDtypeStruct((n_par * 8, _LANES), jnp.float32),
        grid_spec=pltpu.PrefetchScalarGridSpec(
            num_scalar_prefetch=0,
            grid=(n_par, n_tiles),
            in_specs=[tiled, tiled, tiled],
            out_specs=pl.BlockSpec((8, _LANES), lambda p, t: (p, 0)),
            scratch_shapes=[pltpu.VMEM((tile_rows, _LANES), jnp.float32)],
        ),
        compiler_params=pltpu.CompilerParams(
            dimension_semantics=("parallel", "arbitrary")),
    )(x, mu, sigma)

    # Constant term, mean over batch, and the log-variance regularizer are
    # tiny scalar work -> handled in plain JAX (XLA fuses it for free).
    total_logp = jnp.sum(partials) - jnp.float32(n_elem) * _HALF_LOG_2PI
    nll = -total_logp / jnp.float32(B)
    reg = 0.01 * (jnp.sum(max_logvar.astype(jnp.float32))
                  - jnp.sum(min_logvar.astype(jnp.float32)))
    return (nll + reg).astype(jnp.float32)


def nll_loss_ref(new_obs, loc, scale, max_logvar, min_logvar):
    """Pure-JAX reference for correctness checking."""
    x = new_obs.astype(jnp.float32)
    mu = loc.astype(jnp.float32)
    sigma = scale.astype(jnp.float32)
    logp_elem = -0.5 * ((x - mu) / sigma) ** 2 - jnp.log(sigma) - _HALF_LOG_2PI
    logp = jnp.sum(logp_elem, axis=-1)        # (B,)
    nll = -jnp.mean(logp)
    reg = 0.01 * jnp.sum(max_logvar) - 0.01 * jnp.sum(min_logvar)
    return nll + reg


if __name__ == "__main__":
    key = jax.random.PRNGKey(0)
    B, D = 16, 32  # small shapes: batch=16, obs features=32

    k_obs, k_loc, k_scale = jax.random.split(key, 3)
    new_obs = jax.random.normal(k_obs, (B, D), dtype=jnp.float32)
    # "StochasticModel" outputs (synthesized deterministically):
    loc = 0.1 * jax.random.normal(k_loc, (B, D), dtype=jnp.float32)
    scale = jax.nn.softplus(jax.random.normal(k_scale, (B, D), dtype=jnp.float32)) + 1e-3
    # PETS-style learnable log-variance bounds (deterministic init):
    max_logvar = jnp.full((1, D), 0.5, dtype=jnp.float32)
    min_logvar = jnp.full((1, D), -10.0, dtype=jnp.float32)

    loss = nll_loss(new_obs, loc, scale, max_logvar, min_logvar)
    loss = jax.block_until_ready(loss)

    ref = nll_loss_ref(new_obs, loc, scale, max_logvar, min_logvar)
    # Tolerance accounts for f32 reduction-order differences vs. the reference
    # (kernel sums lane-wise partials; reference sums per-row then means).
    assert jnp.allclose(loss, ref, rtol=1e-4, atol=1e-4), (loss, ref)

    print("KERNEL_OK")
</pallas_src>

<mosaic_0001>
module attributes {stable_mosaic.version = 11 : i64} {
  func.func @_nll_partial_kernel(%arg0: i32, %arg1: i32, %arg2: memref<8x128xf32, #tpu.memory_space<vmem>>, %arg3: memref<8x128xf32, #tpu.memory_space<vmem>>, %arg4: memref<8x128xf32, #tpu.memory_space<vmem>>, %arg5: memref<8x128xf32, #tpu.memory_space<vmem>>, %arg6: memref<8x128xf32, #tpu.memory_space<vmem>>) attributes {dimension_semantics = [#tpu.dimension_semantics<parallel>, #tpu.dimension_semantics<arbitrary>], iteration_bounds = array<i64: 1, 1>, scalar_prefetch = 0 : i64, scratch_operands = 1 : i64, tpu.core_type = #tpu.core_type<tc>, window_params = [{transform_indices = @transform_0, window_bounds = array<i64: 8, 128>}, {transform_indices = @transform_1, window_bounds = array<i64: 8, 128>}, {transform_indices = @transform_2, window_bounds = array<i64: 8, 128>}, {transform_indices = @transform_3, window_bounds = array<i64: 8, 128>}]} {
    %c0_i32 = arith.constant 0 : i32
    %0 = arith.cmpi eq, %arg1, %c0_i32 : i32
    %1 = arith.extui %0 : i1 to i32
    %c0_i32_0 = arith.constant 0 : i32
    %2 = arith.cmpi ne, %1, %c0_i32_0 : i32
    scf.if %2 {
      %cst_12 = arith.constant 0.000000e+00 : f32
      %19 = vector.broadcast %cst_12 : f32 to vector<8x128xf32>
      %c0_13 = arith.constant 0 : index
      %c0_14 = arith.constant 0 : index
      %20 = vector.load %arg6[%c0_13, %c0_14] : memref<8x128xf32, #tpu.memory_space<vmem>>, vector<8x128xf32>
      tpu.vector_store %arg6[%c0_13, %c0_14], %19 {strides = array<i32>} : memref<8x128xf32, #tpu.memory_space<vmem>>, vector<8x128xf32>,
    } else {
    }
    %c0 = arith.constant 0 : index
    %c0_1 = arith.constant 0 : index
    %3 = vector.load %arg2[%c0, %c0_1] : memref<8x128xf32, #tpu.memory_space<vmem>>, vector<8x128xf32>
    %c0_2 = arith.constant 0 : index
    %c0_3 = arith.constant 0 : index
    %4 = vector.load %arg3[%c0_2, %c0_3] : memref<8x128xf32, #tpu.memory_space<vmem>>, vector<8x128xf32>
    %c0_4 = arith.constant 0 : index
    %c0_5 = arith.constant 0 : index
    %5 = vector.load %arg4[%c0_4, %c0_5] : memref<8x128xf32, #tpu.memory_space<vmem>>, vector<8x128xf32>
    %6 = arith.subf %3, %4 : vector<8x128xf32>
    %7 = arith.divf %6, %5 : vector<8x128xf32>
    %c0_6 = arith.constant 0 : index
    %c0_7 = arith.constant 0 : index
    %8 = vector.load %arg6[%c0_6, %c0_7] : memref<8x128xf32, #tpu.memory_space<vmem>>, vector<8x128xf32>
    %cst = arith.constant -5.000000e-01 : f32
    %9 = vector.broadcast %cst : f32 to vector<8x128xf32>
    %10 = arith.mulf %9, %7 : vector<8x128xf32>
    %11 = arith.mulf %10, %7 : vector<8x128xf32>
    %12 = math.log %5 : vector<8x128xf32>
    %13 = arith.subf %11, %12 : vector<8x128xf32>
    %14 = arith.addf %8, %13 : vector<8x128xf32>
    %c0_8 = arith.constant 0 : index
    %c0_9 = arith.constant 0 : index
    %15 = vector.load %arg6[%c0_8, %c0_9] : memref<8x128xf32, #tpu.memory_space<vmem>>, vector<8x128xf32>
    tpu.vector_store %arg6[%c0_8, %c0_9], %14 {strides = array<i32>} : memref<8x128xf32, #tpu.memory_space<vmem>>, vector<8x128xf32>,
    %c0_i32_10 = arith.constant 0 : i32
    %16 = arith.cmpi eq, %arg1, %c0_i32_10 : i32
    %17 = arith.extui %16 : i1 to i32
    %c0_i32_11 = arith.constant 0 : i32
    %18 = arith.cmpi ne, %17, %c0_i32_11 : i32
    scf.if %18 {
      %c0_12 = arith.constant 0 : index
      %c0_13 = arith.constant 0 : index
      %19 = vector.load %arg6[%c0_12, %c0_13] : memref<8x128xf32, #tpu.memory_space<vmem>>, vector<8x128xf32>
      %20 = vector.shape_cast %19 : vector<8x128xf32> to vector<1x8x128xf32>
      %cst_14 = arith.constant dense<0.000000e+00> : vector<8x128xf32>
      %21 = vector.multi_reduction <add>, %20, %cst_14 [0] : vector<1x8x128xf32> to vector<8x128xf32>
      %c0_15 = arith.constant 0 : index
      %c0_16 = arith.constant 0 : index
      %22 = vector.load %arg5[%c0_15, %c0_16] : memref<8x128xf32, #tpu.memory_space<vmem>>, vector<8x128xf32>
      tpu.vector_store %arg5[%c0_15, %c0_16], %21 {strides = array<i32>} : memref<8x128xf32, #tpu.memory_space<vmem>>, vector<8x128xf32>,
    } else {
    }
    return
  }
  func.func @transform_0(%arg0: i32, %arg1: i32) -> (i32, i32) {
    %c1_i32 = arith.constant 1 : i32
    %0 = arith.muli %arg0, %c1_i32 : i32
    %1 = arith.addi %0, %arg1 : i32
    %c0_i32 = arith.constant 0 : i32
    %c0_i32_0 = arith.constant 0 : i32
    return %1, %c0_i32 : i32, i32
  }
  func.func @transform_1(%arg0: i32, %arg1: i32) -> (i32, i32) {
    %c1_i32 = arith.constant 1 : i32
    %0 = arith.muli %arg0, %c1_i32 : i32
    %1 = arith.addi %0, %arg1 : i32
    %c0_i32 = arith.constant 0 : i32
    %c0_i32_0 = arith.constant 0 : i32
    return %1, %c0_i32 : i32, i32
  }
  func.func @transform_2(%arg0: i32, %arg1: i32) -> (i32, i32) {
    %c1_i32 = arith.constant 1 : i32
    %0 = arith.muli %arg0, %c1_i32 : i32
    %1 = arith.addi %0, %arg1 : i32
    %c0_i32 = arith.constant 0 : i32
    %c0_i32_0 = arith.constant 0 : i32
    return %1, %c0_i32 : i32, i32
  }
  func.func @transform_3(%arg0: i32, %arg1: i32) -> (i32, i32) {
    %c0_i32 = arith.constant 0 : i32
    %c0_i32_0 = arith.constant 0 : i32
    return %arg0, %c0_i32 : i32, i32
  }
}

</mosaic_0001>

<bundles_post_ra>
// kernel: tpu_custom_call.1
= control target key start
LH: loop header
LB: loop body
LE: loop exit
PB: predicated region body
PF: predicated region fallthrough
CT: control target
= control target key end

     0   :  { %8 = vsyncpa [#allocation4], 0  ;;  %s277_s0 = inlined_call_operand.hbm [shape: f32[8,128], index: 0, kind: input, shape index: {}]   ;;  %s278_s1 = inlined_call_operand.hbm [shape: f32[8,128], index: 1, kind: input, shape index: {}]   ;;  %s279_s2 = inlined_call_operand.hbm [shape: f32[8,128], index: 2, kind: input, shape index: {}]   ;;  %s280_s3 = inlined_call_operand.hbm [shape: f32[8,128], index: 3, kind: output, shape index: {}]  }
   0x1   :  { %9 = vsyncpa [#allocation7], 0 }
   0x2   :  { %10 = vsyncpa [#allocation5], 0  ;;  %s205_s12 = smov [#allocation6]   ;;  %s206_s14 = smov [#allocation3]  }
   0x3   :  { %s33_s13 = sshll.u32 %s205_s12, 4  ;;  %s20_s15 = sshll.u32 %s206_s14, 4  ;;  %s34_s13 = int_to_ptr.vmem [resolvable:$true] %s33_s13  ;;  %s21_s15 = int_to_ptr.vmem [resolvable:$true] %s20_s15 }
   0x4   :  { %s111_s18 = scalar_lea.hbm %s278_s1, 128 }
   0x5   :  { %p112_p0 = scmp.ne.s32.totalorder %s278_s1, %s111_s18  ;;  %p115_p1 = scmp.lt.u32.totalorder %s111_s18, %s278_s1 }
   0x7   :  { %p117_p2 = pnand %p115_p1, %p112_p0 }
   0x9   :  { %120 = shalt.err (!%p117_p2)
}
   0xa   :  { %s121_s23 = scalar_lea.vmem %s34_s13, 128  ;;  %p126_p4 = scmp.lt.s32.totalorder %s34_s13, %s34_s13 }
   0xb   :  { %p122_p3 = scmp.ne.s32.totalorder %s34_s13, %s121_s23  ;;  %p127_p5 = scmp.lt.s32.totalorder %s121_s23, %s121_s23 }
   0xd   :  { %p128_p6 = por %p127_p5, %p126_p4 }
   0xf   :  { %p129_p7 = pnand %p128_p6, %p122_p3 }
  0x11   :  { %132 = shalt.err (!%p129_p7)
}
  0x12   :  { %36 = dma.hbm_to_vmem [thread:$0]  %s278_s1, 128, %s34_s13, [#allocation7]  }
  0x13   :  { %s133_s28 = scalar_lea.hbm %s277_s0, 128 }
  0x14   :  { %p134_p8 = scmp.ne.s32.totalorder %s277_s0, %s133_s28  ;;  %p137_p9 = scmp.lt.u32.totalorder %s133_s28, %s277_s0 }
  0x16   :  { %p139_p10 = pnand %p137_p9, %p134_p8 }
  0x18   :  { %142 = shalt.err (!%p139_p10)
}
  0x19   :  { %s143_s6 = scalar_lea.vmem %s21_s15, 128  ;;  %p148_p12 = scmp.lt.s32.totalorder %s21_s15, %s21_s15 }
  0x1a   :  { %p144_p11 = scmp.ne.s32.totalorder %s21_s15, %s143_s6  ;;  %p149_p13 = scmp.lt.s32.totalorder %s143_s6, %s143_s6 }
  0x1c   :  { %p150_p0 = por %p149_p13, %p148_p12 }
  0x1e   :  { %p151_p1 = pnand %p150_p0, %p144_p11 }
  0x20   :  { %154 = shalt.err (!%p151_p1)
}
  0x21   :  { %23 = dma.hbm_to_vmem [thread:$0]  %s277_s0, 128, %s21_s15, [#allocation4]  }
  0x22   :  { %s207_s8 = smov [#allocation8]   ;;  %s155_s12 = scalar_lea.hbm %s279_s2, 128 }
  0x23   :  { %s46_s9 = sshll.u32 %s207_s8, 4  ;;  %p156_p2 = scmp.ne.s32.totalorder %s279_s2, %s155_s12  ;;  %s47_s9 = int_to_ptr.vmem [resolvable:$true] %s46_s9 }
  0x24   :  { %p159_p3 = scmp.lt.u32.totalorder %s155_s12, %s279_s2 }
  0x26   :  { %p161_p4 = pnand %p159_p3, %p156_p2 }
  0x28   :  { %164 = shalt.err (!%p161_p4)
}
  0x29   :  { %s165_s18 = scalar_lea.vmem %s47_s9, 128  ;;  %p170_p6 = scmp.lt.s32.totalorder %s47_s9, %s47_s9 }
  0x2a   :  { %p166_p5 = scmp.ne.s32.totalorder %s47_s9, %s165_s18  ;;  %p171_p7 = scmp.lt.s32.totalorder %s165_s18, %s165_s18 }
  0x2c   :  { %p172_p8 = por %p171_p7, %p170_p6 }
  0x2e   :  { %p173_p9 = pnand %p172_p8, %p166_p5 }
  0x30   :  { %176 = shalt.err (!%p173_p9)
}
  0x31   :  { %49 = dma.hbm_to_vmem [thread:$0]  %s279_s2, 128, %s47_s9, [#allocation7]  }
  0x32   :  { %199 = dma.done.wait [#allocation4], 128  }
  0x33   :  { %200 = vsyncadd [#allocation4], 4294967168 }
  0x34   :  { %201 = dma.done.wait [#allocation7], 256  }
  0x35   :  { %202 = vsyncadd [#allocation7], 4294967040  ;;  %v69_v0 = vld [vmem:[#allocation8] sm:$0xff]  ;;  %v67_v1 = vld [vmem:[#allocation3] sm:$0xff]  ;;  %s208_s19 = smov [#allocation9]  }
  0x36   :  { %107 = vrcp.f32 %v69_v0  ;;  %v68_v2 = vld [vmem:[#allocation6] sm:$0xff]  ;;  %s93_s20 = sshll.u32 %s208_s19, 4  ;;  %s94_s20 = int_to_ptr.vmem [resolvable:$true] %s93_s20 }
  0x37   :  { %109 = vlog2.f32 %v69_v0  ;;  %v70_v3 = vsub.f32 %v67_v1, %v68_v2  ;;  %s177_s2 = scalar_lea.vmem %s94_s20, 128  ;;  %p182_p11 = scmp.lt.s32.totalorder %s94_s20, %s94_s20 }
  0x38   :  { %p178_p10 = scmp.ne.s32.totalorder %s94_s20, %s177_s2  ;;  %p183_p12 = scmp.lt.s32.totalorder %s177_s2, %s177_s2 }
  0x3a   :  { %p184_p13 = por %p183_p12, %p182_p11 }
  0x3c   :  { %p185_p0 = pnand %p184_p13, %p178_p10 }
  0x40   :  { %v108_v4 = vpop.eup %107 }
  0x41   :  { %v110_v5 = vpop.eup %109  ;;  %v72_v6 = vmul.f32 %v108_v4, %v70_v3 }
  0x42   :  { %v77_v8 = vmul.f32 0.6931472, %v110_v5 }
  0x43   :  { %v74_v7 = vmul.f32 -0.5, %v72_v6 }
  0x45   :  { %v75_v9 = vmul.f32 %v74_v7, %v72_v6 }
  0x47   :  { %v78_v10 = vsub.f32 %v75_v9, %v77_v8 }
  0x49   :  { %86 = vst [vmem:[#allocation9] sm:$0xff] %v78_v10 }
  0x4a   :  { %188 = shalt.err (!%p185_p0)
}
  0x4b   :  { %s189_s23 = scalar_lea.hbm %s280_s3, 128 }
  0x4c   :  { %p190_p1 = scmp.ne.s32.totalorder %s280_s3, %s189_s23  ;;  %p193_p2 = scmp.lt.u32.totalorder %s189_s23, %s280_s3 }
  0x4e   :  { %p195_p3 = pnand %p193_p2, %p190_p1 }
  0x50   :  { %198 = shalt.err (!%p195_p3)
}
  0x51   :  { %96 = dma.vmem_to_hbm [thread:$0]  %s94_s20, 128, %s280_s3, [#allocation5]  }
  0x52   :  { %203 = dma.done.wait [#allocation5], 128  }
  0x53   :  { %204 = vsyncadd [#allocation5], 4294967168 }
  0x54   :  { %100 = vsyncpa [#allocation4], 1 }
  0x55   :  { %101 = vsyncpa [#allocation7], 1 }
  0x56   :  { %102 = vsyncpa [#allocation5], 1 }

</bundles_post_ra>
